<compile_context>
chip_gen: v7x
topology: tpu7x:2x2x1
jax: 0.10.0
libtpu: 0.0.40
codegen_flags: <defaults>
</compile_context>

<pallas_src>
import jax
import jax.numpy as jnp
from jax.experimental import pallas as pl
from jax.experimental.pallas import tpu as pltpu


# ---- packed parameter layout (columns of one (8, PACK_COLS) f32 buffer) ----
# cols  0:4   W1  (8, 4)   layer1  weight, (out, in) layout
# cols  4:12  Ws  (8, 8)   shared  weight
# cols 12:20  W2  (8, 8)   layer2  weight
# col  20     Wo^T (8,)    output  weight (1, 8) stored as a column
# col  21     b1  (8,)
# col  22     bs  (8,)
# col  23     b2  (8,)
# [0,  24]    bo  scalar
PACK_COLS = 25


def _affine_relu_T(w, xt, b):
    """relu(W @ xt + b) with an unrolled VPU MAC over the tiny K axis.

    w: (8, K) in (out, in) layout; xt: (K, TB); b: (8, 1)  ->  (8, TB)
    """
    K = w.shape[1]
    acc = w[:, 0:1] * xt[0:1, :]
    for k in range(1, K):                       # static unroll, K in {4, 8}
        acc = acc + w[:, k:k + 1] * xt[k:k + 1, :]
    return jnp.maximum(acc + b, 0.0)


def _shared_params_kernel(x_ref, p_ref, o_ref):
    # x_ref: (4, TB) transposed input tile; p_ref: (8, PACK_COLS) packed params
    # o_ref: (1, TB) lane-dense output tile
    xt = x_ref[...]
    p = p_ref[...]                              # one VMEM load, sliced in vregs

    w1 = p[:, 0:4]
    ws = p[:, 4:12]
    w2 = p[:, 12:20]
    wo = p[:, 20:21]                            # (8, 1) == output weight^T
    b1 = p[:, 21:22]
    bs = p[:, 22:23]
    b2 = p[:, 23:24]
    bo = p[0:1, 24:25]                          # (1, 1)

    h = _affine_relu_T(w1, xt, b1)              # layer1  + ReLU   (8, TB)
    h = _affine_relu_T(ws, h, bs)               # shared1 + ReLU   (8, TB)
    h = _affine_relu_T(w2, h, b2)               # layer2  + ReLU   (8, TB)
    h = _affine_relu_T(ws, h, bs)               # shared2 + ReLU   (8, TB)

    # output Linear(8, 1): sublane reduce (XLU) instead of a K=8 matmul.
    out = jnp.sum(wo * h, axis=0, keepdims=True) + bo       # (1, TB)
    o_ref[...] = out.astype(o_ref.dtype)


def pack_params(p):
    """Pack all weights/biases into a single (8, PACK_COLS) f32 buffer."""
    buf = jnp.zeros((8, PACK_COLS), jnp.float32)
    buf = buf.at[:, 0:4].set(p["w1"])           # (8, 4)
    buf = buf.at[:, 4:12].set(p["ws"])          # (8, 8)
    buf = buf.at[:, 12:20].set(p["w2"])         # (8, 8)
    buf = buf.at[:, 20].set(p["wo"][0])         # (8,)  <- wo is (1, 8)
    buf = buf.at[:, 21].set(p["b1"])
    buf = buf.at[:, 22].set(p["bs"])
    buf = buf.at[:, 23].set(p["b2"])
    buf = buf.at[0, 24].set(p["bo"][0])
    return buf


def shared_params_net(x, params):
    """x: (B, 4) float32. Returns (B, 1) float32 matching the PyTorch forward."""
    B = x.shape[0]
    # Pad batch (lane axis after transpose) to a multiple of 128 for unmasked,
    # lane-dense loads/stores; pick the largest tile (<=512) that divides Bp.
    Bp = ((B + 127) // 128) * 128
    tb = 512 if Bp % 512 == 0 else (256 if Bp % 256 == 0 else 128)

    xt = jnp.transpose(x.astype(jnp.float32))            # (4, B)
    xt = jnp.pad(xt, ((0, 0), (0, Bp - B)))              # (4, Bp)
    packed = pack_params(params)                         # (8, PACK_COLS)

    out_t = pl.pallas_call(
        _shared_params_kernel,
        out_shape=jax.ShapeDtypeStruct((1, Bp), jnp.float32),
        grid=(Bp // tb,),
        in_specs=[
            pl.BlockSpec((4, tb), lambda i: (0, i)),           # x^T tile
            pl.BlockSpec((8, PACK_COLS), lambda i: (0, 0)),    # packed params
        ],
        out_specs=pl.BlockSpec((1, tb), lambda i: (0, i)),
        compiler_params=pltpu.CompilerParams(
            dimension_semantics=("parallel",)),                # megacore on v7x
    )(xt, packed)

    return out_t[:, :B].T                                 # (B, 1)


def init_params(key):
    """nn.Linear-style init: uniform(+-1/sqrt(fan_in)); W in (out, in) layout."""
    def linear(key, fan_in, fan_out):
        kw, kb = jax.random.split(key)
        bound = 1.0 / jnp.sqrt(float(fan_in))
        w = jax.random.uniform(kw, (fan_out, fan_in), jnp.float32, -bound, bound)
        b = jax.random.uniform(kb, (fan_out,), jnp.float32, -bound, bound)
        return w, b

    k1, ks, k2, ko = jax.random.split(key, 4)
    w1, b1 = linear(k1, 4, 8)    # layer1  : Linear(4, 8)
    ws, bs = linear(ks, 8, 8)    # shared  : Linear(8, 8)   (used twice)
    w2, b2 = linear(k2, 8, 8)    # layer2  : Linear(8, 8)
    wo, bo = linear(ko, 8, 1)    # output  : Linear(8, 1)
    return {"w1": w1, "b1": b1, "ws": ws, "bs": bs,
            "w2": w2, "b2": b2, "wo": wo, "bo": bo}


def shared_params_net_ref(x, p):
    """Pure-JAX reference mirroring the PyTorch forward (x @ W.T + b)."""
    h = jax.nn.relu(x @ p["w1"].T + p["b1"])
    h = jax.nn.relu(h @ p["ws"].T + p["bs"])
    h = jax.nn.relu(h @ p["w2"].T + p["b2"])
    h = jax.nn.relu(h @ p["ws"].T + p["bs"])
    return h @ p["wo"].T + p["bo"]


if __name__ == "__main__":
    key = jax.random.PRNGKey(0)
    kx, kp = jax.random.split(key)

    # Input consistent with the module's X = torch.rand(2, 4).
    x = jax.random.uniform(kx, (2, 4), jnp.float32)
    params = init_params(kp)

    out = shared_params_net(x, params)
    out = jax.block_until_ready(out)

    ref = shared_params_net_ref(x, params)
    assert out.shape == (2, 1), out.shape
    assert jnp.allclose(out, ref, atol=1e-5, rtol=1e-5), (out, ref)

    print("KERNEL_OK")
</pallas_src>

<mosaic_0001>
module attributes {stable_mosaic.version = 11 : i64} {
  func.func @_shared_params_kernel(%arg0: i32, %arg1: memref<4x128xf32, #tpu.memory_space<vmem>>, %arg2: memref<8x25xf32, #tpu.memory_space<vmem>>, %arg3: memref<1x128xf32, #tpu.memory_space<vmem>>) attributes {dimension_semantics = [#tpu.dimension_semantics<parallel>], iteration_bounds = array<i64: 1>, scalar_prefetch = 0 : i64, scratch_operands = 0 : i64, tpu.core_type = #tpu.core_type<tc>, window_params = [{transform_indices = @transform_0, window_bounds = array<i64: 4, 128>}, {pipeline_mode = #tpu.pipeline_mode<synchronous>, transform_indices = @transform_1, window_bounds = array<i64: 8, 25>}, {transform_indices = @transform_2, window_bounds = array<i64: 1, 128>}]} {
    %c0 = arith.constant 0 : index
    %c0_0 = arith.constant 0 : index
    %0 = vector.load %arg1[%c0, %c0_0] : memref<4x128xf32, #tpu.memory_space<vmem>>, vector<4x128xf32>
    %c0_1 = arith.constant 0 : index
    %c0_2 = arith.constant 0 : index
    %1 = vector.load %arg2[%c0_1, %c0_2] : memref<8x25xf32, #tpu.memory_space<vmem>>, vector<8x25xf32>
    %2 = vector.extract_strided_slice %1 {offsets = [0, 0], sizes = [8, 4], strides = [1, 1]} : vector<8x25xf32> to vector<8x4xf32>
    %3 = vector.extract_strided_slice %1 {offsets = [0, 4], sizes = [8, 8], strides = [1, 1]} : vector<8x25xf32> to vector<8x8xf32>
    %4 = vector.extract_strided_slice %1 {offsets = [0, 12], sizes = [8, 8], strides = [1, 1]} : vector<8x25xf32> to vector<8x8xf32>
    %5 = vector.extract_strided_slice %1 {offsets = [0, 20], sizes = [8, 1], strides = [1, 1]} : vector<8x25xf32> to vector<8x1xf32>
    %6 = vector.extract_strided_slice %1 {offsets = [0, 21], sizes = [8, 1], strides = [1, 1]} : vector<8x25xf32> to vector<8x1xf32>
    %7 = vector.extract_strided_slice %1 {offsets = [0, 22], sizes = [8, 1], strides = [1, 1]} : vector<8x25xf32> to vector<8x1xf32>
    %8 = vector.extract_strided_slice %1 {offsets = [0, 23], sizes = [8, 1], strides = [1, 1]} : vector<8x25xf32> to vector<8x1xf32>
    %9 = vector.extract_strided_slice %1 {offsets = [0, 24], sizes = [1, 1], strides = [1, 1]} : vector<8x25xf32> to vector<1x1xf32>
    %10 = vector.extract_strided_slice %2 {offsets = [0, 0], sizes = [8, 1], strides = [1, 1]} : vector<8x4xf32> to vector<8x1xf32>
    %11 = vector.extract_strided_slice %0 {offsets = [0, 0], sizes = [1, 128], strides = [1, 1]} : vector<4x128xf32> to vector<1x128xf32>
    %12 = vector.broadcast %10 : vector<8x1xf32> to vector<8x128xf32>
    %13 = vector.broadcast %11 : vector<1x128xf32> to vector<8x128xf32>
    %14 = arith.mulf %12, %13 : vector<8x128xf32>
    %15 = vector.extract_strided_slice %2 {offsets = [0, 1], sizes = [8, 1], strides = [1, 1]} : vector<8x4xf32> to vector<8x1xf32>
    %16 = vector.extract_strided_slice %0 {offsets = [1, 0], sizes = [1, 128], strides = [1, 1]} : vector<4x128xf32> to vector<1x128xf32>
    %17 = vector.broadcast %15 : vector<8x1xf32> to vector<8x128xf32>
    %18 = vector.broadcast %16 : vector<1x128xf32> to vector<8x128xf32>
    %19 = arith.mulf %17, %18 : vector<8x128xf32>
    %20 = arith.addf %14, %19 : vector<8x128xf32>
    %21 = vector.extract_strided_slice %2 {offsets = [0, 2], sizes = [8, 1], strides = [1, 1]} : vector<8x4xf32> to vector<8x1xf32>
    %22 = vector.extract_strided_slice %0 {offsets = [2, 0], sizes = [1, 128], strides = [1, 1]} : vector<4x128xf32> to vector<1x128xf32>
    %23 = vector.broadcast %21 : vector<8x1xf32> to vector<8x128xf32>
    %24 = vector.broadcast %22 : vector<1x128xf32> to vector<8x128xf32>
    %25 = arith.mulf %23, %24 : vector<8x128xf32>
    %26 = arith.addf %20, %25 : vector<8x128xf32>
    %27 = vector.extract_strided_slice %2 {offsets = [0, 3], sizes = [8, 1], strides = [1, 1]} : vector<8x4xf32> to vector<8x1xf32>
    %28 = vector.extract_strided_slice %0 {offsets = [3, 0], sizes = [1, 128], strides = [1, 1]} : vector<4x128xf32> to vector<1x128xf32>
    %29 = vector.broadcast %27 : vector<8x1xf32> to vector<8x128xf32>
    %30 = vector.broadcast %28 : vector<1x128xf32> to vector<8x128xf32>
    %31 = arith.mulf %29, %30 : vector<8x128xf32>
    %32 = arith.addf %26, %31 : vector<8x128xf32>
    %33 = vector.broadcast %6 : vector<8x1xf32> to vector<8x128xf32>
    %34 = arith.addf %32, %33 : vector<8x128xf32>
    %cst = arith.constant 0.000000e+00 : f32
    %35 = vector.broadcast %cst : f32 to vector<8x128xf32>
    %36 = arith.maximumf %34, %35 : vector<8x128xf32>
    %37 = vector.extract_strided_slice %3 {offsets = [0, 0], sizes = [8, 1], strides = [1, 1]} : vector<8x8xf32> to vector<8x1xf32>
    %38 = vector.extract_strided_slice %36 {offsets = [0, 0], sizes = [1, 128], strides = [1, 1]} : vector<8x128xf32> to vector<1x128xf32>
    %39 = vector.broadcast %37 : vector<8x1xf32> to vector<8x128xf32>
    %40 = vector.broadcast %38 : vector<1x128xf32> to vector<8x128xf32>
    %41 = arith.mulf %39, %40 : vector<8x128xf32>
    %42 = vector.extract_strided_slice %3 {offsets = [0, 1], sizes = [8, 1], strides = [1, 1]} : vector<8x8xf32> to vector<8x1xf32>
    %43 = vector.extract_strided_slice %36 {offsets = [1, 0], sizes = [1, 128], strides = [1, 1]} : vector<8x128xf32> to vector<1x128xf32>
    %44 = vector.broadcast %42 : vector<8x1xf32> to vector<8x128xf32>
    %45 = vector.broadcast %43 : vector<1x128xf32> to vector<8x128xf32>
    %46 = arith.mulf %44, %45 : vector<8x128xf32>
    %47 = arith.addf %41, %46 : vector<8x128xf32>
    %48 = vector.extract_strided_slice %3 {offsets = [0, 2], sizes = [8, 1], strides = [1, 1]} : vector<8x8xf32> to vector<8x1xf32>
    %49 = vector.extract_strided_slice %36 {offsets = [2, 0], sizes = [1, 128], strides = [1, 1]} : vector<8x128xf32> to vector<1x128xf32>
    %50 = vector.broadcast %48 : vector<8x1xf32> to vector<8x128xf32>
    %51 = vector.broadcast %49 : vector<1x128xf32> to vector<8x128xf32>
    %52 = arith.mulf %50, %51 : vector<8x128xf32>
    %53 = arith.addf %47, %52 : vector<8x128xf32>
    %54 = vector.extract_strided_slice %3 {offsets = [0, 3], sizes = [8, 1], strides = [1, 1]} : vector<8x8xf32> to vector<8x1xf32>
    %55 = vector.extract_strided_slice %36 {offsets = [3, 0], sizes = [1, 128], strides = [1, 1]} : vector<8x128xf32> to vector<1x128xf32>
    %56 = vector.broadcast %54 : vector<8x1xf32> to vector<8x128xf32>
    %57 = vector.broadcast %55 : vector<1x128xf32> to vector<8x128xf32>
    %58 = arith.mulf %56, %57 : vector<8x128xf32>
    %59 = arith.addf %53, %58 : vector<8x128xf32>
    %60 = vector.extract_strided_slice %3 {offsets = [0, 4], sizes = [8, 1], strides = [1, 1]} : vector<8x8xf32> to vector<8x1xf32>
    %61 = vector.extract_strided_slice %36 {offsets = [4, 0], sizes = [1, 128], strides = [1, 1]} : vector<8x128xf32> to vector<1x128xf32>
    %62 = vector.broadcast %60 : vector<8x1xf32> to vector<8x128xf32>
    %63 = vector.broadcast %61 : vector<1x128xf32> to vector<8x128xf32>
    %64 = arith.mulf %62, %63 : vector<8x128xf32>
    %65 = arith.addf %59, %64 : vector<8x128xf32>
    %66 = vector.extract_strided_slice %3 {offsets = [0, 5], sizes = [8, 1], strides = [1, 1]} : vector<8x8xf32> to vector<8x1xf32>
    %67 = vector.extract_strided_slice %36 {offsets = [5, 0], sizes = [1, 128], strides = [1, 1]} : vector<8x128xf32> to vector<1x128xf32>
    %68 = vector.broadcast %66 : vector<8x1xf32> to vector<8x128xf32>
    %69 = vector.broadcast %67 : vector<1x128xf32> to vector<8x128xf32>
    %70 = arith.mulf %68, %69 : vector<8x128xf32>
    %71 = arith.addf %65, %70 : vector<8x128xf32>
    %72 = vector.extract_strided_slice %3 {offsets = [0, 6], sizes = [8, 1], strides = [1, 1]} : vector<8x8xf32> to vector<8x1xf32>
    %73 = vector.extract_strided_slice %36 {offsets = [6, 0], sizes = [1, 128], strides = [1, 1]} : vector<8x128xf32> to vector<1x128xf32>
    %74 = vector.broadcast %72 : vector<8x1xf32> to vector<8x128xf32>
    %75 = vector.broadcast %73 : vector<1x128xf32> to vector<8x128xf32>
    %76 = arith.mulf %74, %75 : vector<8x128xf32>
    %77 = arith.addf %71, %76 : vector<8x128xf32>
    %78 = vector.extract_strided_slice %3 {offsets = [0, 7], sizes = [8, 1], strides = [1, 1]} : vector<8x8xf32> to vector<8x1xf32>
    %79 = vector.extract_strided_slice %36 {offsets = [7, 0], sizes = [1, 128], strides = [1, 1]} : vector<8x128xf32> to vector<1x128xf32>
    %80 = vector.broadcast %78 : vector<8x1xf32> to vector<8x128xf32>
    %81 = vector.broadcast %79 : vector<1x128xf32> to vector<8x128xf32>
    %82 = arith.mulf %80, %81 : vector<8x128xf32>
    %83 = arith.addf %77, %82 : vector<8x128xf32>
    %84 = vector.broadcast %7 : vector<8x1xf32> to vector<8x128xf32>
    %85 = arith.addf %83, %84 : vector<8x128xf32>
    %cst_3 = arith.constant 0.000000e+00 : f32
    %86 = vector.broadcast %cst_3 : f32 to vector<8x128xf32>
    %87 = arith.maximumf %85, %86 : vector<8x128xf32>
    %88 = vector.extract_strided_slice %4 {offsets = [0, 0], sizes = [8, 1], strides = [1, 1]} : vector<8x8xf32> to vector<8x1xf32>
    %89 = vector.extract_strided_slice %87 {offsets = [0, 0], sizes = [1, 128], strides = [1, 1]} : vector<8x128xf32> to vector<1x128xf32>
    %90 = vector.broadcast %88 : vector<8x1xf32> to vector<8x128xf32>
    %91 = vector.broadcast %89 : vector<1x128xf32> to vector<8x128xf32>
    %92 = arith.mulf %90, %91 : vector<8x128xf32>
    %93 = vector.extract_strided_slice %4 {offsets = [0, 1], sizes = [8, 1], strides = [1, 1]} : vector<8x8xf32> to vector<8x1xf32>
    %94 = vector.extract_strided_slice %87 {offsets = [1, 0], sizes = [1, 128], strides = [1, 1]} : vector<8x128xf32> to vector<1x128xf32>
    %95 = vector.broadcast %93 : vector<8x1xf32> to vector<8x128xf32>
    %96 = vector.broadcast %94 : vector<1x128xf32> to vector<8x128xf32>
    %97 = arith.mulf %95, %96 : vector<8x128xf32>
    %98 = arith.addf %92, %97 : vector<8x128xf32>
    %99 = vector.extract_strided_slice %4 {offsets = [0, 2], sizes = [8, 1], strides = [1, 1]} : vector<8x8xf32> to vector<8x1xf32>
    %100 = vector.extract_strided_slice %87 {offsets = [2, 0], sizes = [1, 128], strides = [1, 1]} : vector<8x128xf32> to vector<1x128xf32>
    %101 = vector.broadcast %99 : vector<8x1xf32> to vector<8x128xf32>
    %102 = vector.broadcast %100 : vector<1x128xf32> to vector<8x128xf32>
    %103 = arith.mulf %101, %102 : vector<8x128xf32>
    %104 = arith.addf %98, %103 : vector<8x128xf32>
    %105 = vector.extract_strided_slice %4 {offsets = [0, 3], sizes = [8, 1], strides = [1, 1]} : vector<8x8xf32> to vector<8x1xf32>
    %106 = vector.extract_strided_slice %87 {offsets = [3, 0], sizes = [1, 128], strides = [1, 1]} : vector<8x128xf32> to vector<1x128xf32>
    %107 = vector.broadcast %105 : vector<8x1xf32> to vector<8x128xf32>
    %108 = vector.broadcast %106 : vector<1x128xf32> to vector<8x128xf32>
    %109 = arith.mulf %107, %108 : vector<8x128xf32>
    %110 = arith.addf %104, %109 : vector<8x128xf32>
    %111 = vector.extract_strided_slice %4 {offsets = [0, 4], sizes = [8, 1], strides = [1, 1]} : vector<8x8xf32> to vector<8x1xf32>
    %112 = vector.extract_strided_slice %87 {offsets = [4, 0], sizes = [1, 128], strides = [1, 1]} : vector<8x128xf32> to vector<1x128xf32>
    %113 = vector.broadcast %111 : vector<8x1xf32> to vector<8x128xf32>
    %114 = vector.broadcast %112 : vector<1x128xf32> to vector<8x128xf32>
    %115 = arith.mulf %113, %114 : vector<8x128xf32>
    %116 = arith.addf %110, %115 : vector<8x128xf32>
    %117 = vector.extract_strided_slice %4 {offsets = [0, 5], sizes = [8, 1], strides = [1, 1]} : vector<8x8xf32> to vector<8x1xf32>
    %118 = vector.extract_strided_slice %87 {offsets = [5, 0], sizes = [1, 128], strides = [1, 1]} : vector<8x128xf32> to vector<1x128xf32>
    %119 = vector.broadcast %117 : vector<8x1xf32> to vector<8x128xf32>
    %120 = vector.broadcast %118 : vector<1x128xf32> to vector<8x128xf32>
    %121 = arith.mulf %119, %120 : vector<8x128xf32>
    %122 = arith.addf %116, %121 : vector<8x128xf32>
    %123 = vector.extract_strided_slice %4 {offsets = [0, 6], sizes = [8, 1], strides = [1, 1]} : vector<8x8xf32> to vector<8x1xf32>
    %124 = vector.extract_strided_slice %87 {offsets = [6, 0], sizes = [1, 128], strides = [1, 1]} : vector<8x128xf32> to vector<1x128xf32>
    %125 = vector.broadcast %123 : vector<8x1xf32> to vector<8x128xf32>
    %126 = vector.broadcast %124 : vector<1x128xf32> to vector<8x128xf32>
    %127 = arith.mulf %125, %126 : vector<8x128xf32>
    %128 = arith.addf %122, %127 : vector<8x128xf32>
    %129 = vector.extract_strided_slice %4 {offsets = [0, 7], sizes = [8, 1], strides = [1, 1]} : vector<8x8xf32> to vector<8x1xf32>
    %130 = vector.extract_strided_slice %87 {offsets = [7, 0], sizes = [1, 128], strides = [1, 1]} : vector<8x128xf32> to vector<1x128xf32>
    %131 = vector.broadcast %129 : vector<8x1xf32> to vector<8x128xf32>
    %132 = vector.broadcast %130 : vector<1x128xf32> to vector<8x128xf32>
    %133 = arith.mulf %131, %132 : vector<8x128xf32>
    %134 = arith.addf %128, %133 : vector<8x128xf32>
    %135 = vector.broadcast %8 : vector<8x1xf32> to vector<8x128xf32>
    %136 = arith.addf %134, %135 : vector<8x128xf32>
    %cst_4 = arith.constant 0.000000e+00 : f32
    %137 = vector.broadcast %cst_4 : f32 to vector<8x128xf32>
    %138 = arith.maximumf %136, %137 : vector<8x128xf32>
    %139 = vector.extract_strided_slice %3 {offsets = [0, 0], sizes = [8, 1], strides = [1, 1]} : vector<8x8xf32> to vector<8x1xf32>
    %140 = vector.extract_strided_slice %138 {offsets = [0, 0], sizes = [1, 128], strides = [1, 1]} : vector<8x128xf32> to vector<1x128xf32>
    %141 = vector.broadcast %139 : vector<8x1xf32> to vector<8x128xf32>
    %142 = vector.broadcast %140 : vector<1x128xf32> to vector<8x128xf32>
    %143 = arith.mulf %141, %142 : vector<8x128xf32>
    %144 = vector.extract_strided_slice %3 {offsets = [0, 1], sizes = [8, 1], strides = [1, 1]} : vector<8x8xf32> to vector<8x1xf32>
    %145 = vector.extract_strided_slice %138 {offsets = [1, 0], sizes = [1, 128], strides = [1, 1]} : vector<8x128xf32> to vector<1x128xf32>
    %146 = vector.broadcast %144 : vector<8x1xf32> to vector<8x128xf32>
    %147 = vector.broadcast %145 : vector<1x128xf32> to vector<8x128xf32>
    %148 = arith.mulf %146, %147 : vector<8x128xf32>
    %149 = arith.addf %143, %148 : vector<8x128xf32>
    %150 = vector.extract_strided_slice %3 {offsets = [0, 2], sizes = [8, 1], strides = [1, 1]} : vector<8x8xf32> to vector<8x1xf32>
    %151 = vector.extract_strided_slice %138 {offsets = [2, 0], sizes = [1, 128], strides = [1, 1]} : vector<8x128xf32> to vector<1x128xf32>
    %152 = vector.broadcast %150 : vector<8x1xf32> to vector<8x128xf32>
    %153 = vector.broadcast %151 : vector<1x128xf32> to vector<8x128xf32>
    %154 = arith.mulf %152, %153 : vector<8x128xf32>
    %155 = arith.addf %149, %154 : vector<8x128xf32>
    %156 = vector.extract_strided_slice %3 {offsets = [0, 3], sizes = [8, 1], strides = [1, 1]} : vector<8x8xf32> to vector<8x1xf32>
    %157 = vector.extract_strided_slice %138 {offsets = [3, 0], sizes = [1, 128], strides = [1, 1]} : vector<8x128xf32> to vector<1x128xf32>
    %158 = vector.broadcast %156 : vector<8x1xf32> to vector<8x128xf32>
    %159 = vector.broadcast %157 : vector<1x128xf32> to vector<8x128xf32>
    %160 = arith.mulf %158, %159 : vector<8x128xf32>
    %161 = arith.addf %155, %160 : vector<8x128xf32>
    %162 = vector.extract_strided_slice %3 {offsets = [0, 4], sizes = [8, 1], strides = [1, 1]} : vector<8x8xf32> to vector<8x1xf32>
    %163 = vector.extract_strided_slice %138 {offsets = [4, 0], sizes = [1, 128], strides = [1, 1]} : vector<8x128xf32> to vector<1x128xf32>
    %164 = vector.broadcast %162 : vector<8x1xf32> to vector<8x128xf32>
    %165 = vector.broadcast %163 : vector<1x128xf32> to vector<8x128xf32>
    %166 = arith.mulf %164, %165 : vector<8x128xf32>
    %167 = arith.addf %161, %166 : vector<8x128xf32>
    %168 = vector.extract_strided_slice %3 {offsets = [0, 5], sizes = [8, 1], strides = [1, 1]} : vector<8x8xf32> to vector<8x1xf32>
    %169 = vector.extract_strided_slice %138 {offsets = [5, 0], sizes = [1, 128], strides = [1, 1]} : vector<8x128xf32> to vector<1x128xf32>
    %170 = vector.broadcast %168 : vector<8x1xf32> to vector<8x128xf32>
    %171 = vector.broadcast %169 : vector<1x128xf32> to vector<8x128xf32>
    %172 = arith.mulf %170, %171 : vector<8x128xf32>
    %173 = arith.addf %167, %172 : vector<8x128xf32>
    %174 = vector.extract_strided_slice %3 {offsets = [0, 6], sizes = [8, 1], strides = [1, 1]} : vector<8x8xf32> to vector<8x1xf32>
    %175 = vector.extract_strided_slice %138 {offsets = [6, 0], sizes = [1, 128], strides = [1, 1]} : vector<8x128xf32> to vector<1x128xf32>
    %176 = vector.broadcast %174 : vector<8x1xf32> to vector<8x128xf32>
    %177 = vector.broadcast %175 : vector<1x128xf32> to vector<8x128xf32>
    %178 = arith.mulf %176, %177 : vector<8x128xf32>
    %179 = arith.addf %173, %178 : vector<8x128xf32>
    %180 = vector.extract_strided_slice %3 {offsets = [0, 7], sizes = [8, 1], strides = [1, 1]} : vector<8x8xf32> to vector<8x1xf32>
    %181 = vector.extract_strided_slice %138 {offsets = [7, 0], sizes = [1, 128], strides = [1, 1]} : vector<8x128xf32> to vector<1x128xf32>
    %182 = vector.broadcast %180 : vector<8x1xf32> to vector<8x128xf32>
    %183 = vector.broadcast %181 : vector<1x128xf32> to vector<8x128xf32>
    %184 = arith.mulf %182, %183 : vector<8x128xf32>
    %185 = arith.addf %179, %184 : vector<8x128xf32>
    %186 = vector.broadcast %7 : vector<8x1xf32> to vector<8x128xf32>
    %187 = arith.addf %185, %186 : vector<8x128xf32>
    %cst_5 = arith.constant 0.000000e+00 : f32
    %188 = vector.broadcast %cst_5 : f32 to vector<8x128xf32>
    %189 = arith.maximumf %187, %188 : vector<8x128xf32>
    %190 = vector.broadcast %5 : vector<8x1xf32> to vector<8x128xf32>
    %191 = arith.mulf %190, %189 : vector<8x128xf32>
    %cst_6 = arith.constant dense<0.000000e+00> : vector<128xf32>
    %192 = vector.multi_reduction <add>, %191, %cst_6 [0] : vector<8x128xf32> to vector<128xf32>
    %193 = vector.shape_cast %192 : vector<128xf32> to vector<1x128xf32>
    %194 = vector.broadcast %9 : vector<1x1xf32> to vector<1x128xf32>
    %195 = arith.addf %193, %194 : vector<1x128xf32>
    %c0_7 = arith.constant 0 : index
    %c0_8 = arith.constant 0 : index
    %196 = vector.load %arg3[%c0_7, %c0_8] : memref<1x128xf32, #tpu.memory_space<vmem>>, vector<1x128xf32>
    tpu.vector_store %arg3[%c0_7, %c0_8], %195 {strides = array<i32>} : memref<1x128xf32, #tpu.memory_space<vmem>>, vector<1x128xf32>,
    return
  }
  func.func @transform_0(%arg0: i32) -> (i32, i32) {
    %c0_i32 = arith.constant 0 : i32
    %c0_i32_0 = arith.constant 0 : i32
    return %c0_i32, %arg0 : i32, i32
  }
  func.func @transform_1(%arg0: i32) -> (i32, i32) {
    %c0_i32 = arith.constant 0 : i32
    %c0_i32_0 = arith.constant 0 : i32
    %c0_i32_1 = arith.constant 0 : i32
    return %c0_i32, %c0_i32_0 : i32, i32
  }
  func.func @transform_2(%arg0: i32) -> (i32, i32) {
    %c0_i32 = arith.constant 0 : i32
    %c0_i32_0 = arith.constant 0 : i32
    return %c0_i32, %arg0 : i32, i32
  }
}

</mosaic_0001>

<bundles_post_ra>
// kernel: tpu_custom_call.1
= control target key start
LH: loop header
LB: loop body
LE: loop exit
PB: predicated region body
PF: predicated region fallthrough
CT: control target
= control target key end

     0   :  { %7 = vsyncpa [#allocation3], 0  ;;  %s640_s0 = inlined_call_operand.hbm [shape: f32[4,128], index: 0, kind: input, shape index: {}]   ;;  %s641_s1 = inlined_call_operand.hbm [shape: f32[8,25], index: 1, kind: input, shape index: {}]   ;;  %s642_s2 = inlined_call_operand.hbm [shape: f32[1,128], index: 2, kind: output, shape index: {}]  }
   0x1   :  { %8 = vsyncpa [#allocation6], 0 }
   0x2   :  { %9 = vsyncpa [#allocation4], 0  ;;  %s462_s9 = smov [#allocation2]   ;;  %s463_s11 = smov [#allocation5]  }
   0x3   :  { %s16_s10 = sshll.u32 %s462_s9, 4  ;;  %s26_s12 = sshll.u32 %s463_s11, 4  ;;  %s17_s10 = int_to_ptr.vmem [resolvable:$true] %s16_s10  ;;  %s27_s12 = int_to_ptr.vmem [resolvable:$true] %s26_s12 }
   0x4   :  { %s390_s15 = scalar_lea.hbm %s640_s0, 64 }
   0x5   :  { %p391_p0 = scmp.ne.s32.totalorder %s640_s0, %s390_s15  ;;  %p394_p1 = scmp.lt.u32.totalorder %s390_s15, %s640_s0 }
   0x7   :  { %p396_p2 = pnand %p394_p1, %p391_p0 }
   0x9   :  { %399 = shalt.err (!%p396_p2)
}
   0xa   :  { %s400_s20 = scalar_lea.vmem %s17_s10, 64  ;;  %p405_p4 = scmp.lt.s32.totalorder %s17_s10, %s17_s10 }
   0xb   :  { %p401_p3 = scmp.ne.s32.totalorder %s17_s10, %s400_s20  ;;  %p406_p5 = scmp.lt.s32.totalorder %s400_s20, %s400_s20 }
   0xd   :  { %p407_p6 = por %p406_p5, %p405_p4 }
   0xf   :  { %p408_p7 = pnand %p407_p6, %p401_p3 }
  0x11   :  { %411 = shalt.err (!%p408_p7)
}
  0x12   :  { %19 = dma.hbm_to_vmem [thread:$0]  %s640_s0, 64, %s17_s10, [#allocation3]  }
  0x13   :  { %s412_s25 = scalar_lea.hbm %s641_s1, 128 }
  0x14   :  { %p413_p8 = scmp.ne.s32.totalorder %s641_s1, %s412_s25  ;;  %p416_p9 = scmp.lt.u32.totalorder %s412_s25, %s641_s1 }
  0x16   :  { %p418_p10 = pnand %p416_p9, %p413_p8 }
  0x18   :  { %421 = shalt.err (!%p418_p10)
}
  0x19   :  { %s422_s30 = scalar_lea.vmem %s27_s12, 128  ;;  %p427_p12 = scmp.lt.s32.totalorder %s27_s12, %s27_s12 }
  0x1a   :  { %p423_p11 = scmp.ne.s32.totalorder %s27_s12, %s422_s30  ;;  %p428_p13 = scmp.lt.s32.totalorder %s422_s30, %s422_s30 }
  0x1c   :  { %p429_p0 = por %p428_p13, %p427_p12 }
  0x1e   :  { %p430_p1 = pnand %p429_p0, %p423_p11 }
  0x20   :  { %433 = shalt.err (!%p430_p1)
}
  0x21   :  { %29 = dma.hbm_to_vmem [thread:$0]  %s641_s1, 128, %s27_s12, [#allocation6]  }
  0x22   :  { %456 = dma.done.wait [#allocation3], 64  }
  0x23   :  { %457 = vsyncadd [#allocation3], 4294967232 }
  0x24   :  { %458 = dma.done.wait [#allocation6], 128  }
  0x25   :  { %459 = vsyncadd [#allocation6], 4294967168  ;;  %v464_v0 = vmov 2   ;;  %v465_v1 = vmov 0   ;;  %v529_v2 = vld [vmem:[#allocation5] sm:$0xff]  ;;  %v466_v3 = vmov 3   ;;  %v43_v26 = vlaneseq }
  0x26   :  { %366 = vset.pattern.permute.xlu1 %v464_v0  ;;  %364 = vset.pattern.permute.xlu0 %v465_v1  ;;  %v467_v4 = vmov 1   ;;  %v468_v5 = vmov 21   ;;  %v469_v6 = vmov 4   ;;  %v470_v7 = vmov 5   ;;  %v36_v30 = vld [vmem:[#allocation2] sm:$0xf] }
  0x27   :  { %59 = vperm.xlu1 %366, %v529_v2   ;;  %40 = vperm.xlu0 %364, %v529_v2   ;;  %v471_v8 = vmov 7   ;;  %v472_v9 = vmov 6   ;;  %v473_v10 = vmov 10   ;;  %v474_v11 = vmov 8   ;;  %s489_s1 = smov [#allocation7]  }
  0x28   :  { %v475_v12 = vmov 12   ;;  %v476_v13 = vmov 9   ;;  %v477_v14 = vmov 15   ;;  %v478_v15 = vmov 11   ;;  %s326_s4 = sshll.u32 %s489_s1, 4  ;;  %s327_s4 = int_to_ptr.vmem [resolvable:$true] %s326_s4 }
  0x29   :  { %v479_v16 = vmov 18   ;;  %v480_v17 = vmov 22   ;;  %v481_v18 = vmov 20   ;;  %v482_v19 = vmov 13   ;;  %s434_s5 = scalar_lea.vmem %s327_s4, 16  ;;  %s438_s6 = scalar_lea.vmem %s327_s4, 32 }
  0x2a   :  { %v483_v20 = vmov 24   ;;  %v484_v21 = vmov 14   ;;  %v485_v22 = vmov 16   ;;  %v486_v23 = vmov 17   ;;  %p435_p2 = scmp.ne.s32.totalorder %s327_s4, %s434_s5  ;;  %p439_p3 = scmp.lt.s32.totalorder %s327_s4, %s327_s4 }
  0x2b   :  { %367 = vset.pattern.permute.xlu1 %v466_v3  ;;  %365 = vset.pattern.permute.xlu0 %v467_v4  ;;  %v487_v24 = vmov 19   ;;  %v488_v25 = vmov 23   ;;  %v44_v27 = vshrl.u32 %v43_v26, 7  ;;  %p440_p4 = scmp.lt.s32.totalorder %s438_s6, %s434_s5 }
  0x2c   :  { %69 = vperm.xlu1 %367, %v529_v2   ;;  %49 = vperm.xlu0 %365, %v529_v2  }
  0x2d   :  { %v556_v28 = vsub.s32 0, %v44_v27  ;;  %v558_v29 = vsub.s32 1, %v44_v27  ;;  %v560_v31 = vsub.s32 2, %v44_v27  ;;  %v563_v35 = vsub.s32 3, %v44_v27  ;;  %p441_p5 = por %p440_p4, %p439_p3 }
  0x2e   :  { %v581_v61 = vsub.s32 4, %v44_v27 }
  0x2f   :  { %v46_v34 = vrot.slane %v36_v30, %v556_v28  ;;  %v55_v36 = vrot.slane %v36_v30, %v558_v29  ;;  %v65_v37 = vrot.slane %v36_v30, %v560_v31  ;;  %v75_v41 = vrot.slane %v36_v30, %v563_v35  ;;  %p442_p6 = pnand %p441_p5, %p435_p2 }
  0x30   :  { %368 = vset.pattern.permute.xlu1 %v468_v5  ;;  %369 = vset.pattern.permute.xlu0 %v469_v6  ;;  %v591_v5 = vsub.s32 5, %v44_v27 }
  0x31   :  { %79 = vperm.xlu1 %368, %v529_v2   ;;  %85 = vperm.xlu0 %369, %v529_v2  }
  0x35   :  { %370 = vset.pattern.permute.xlu1 %v470_v7  ;;  %372 = vset.pattern.permute.xlu0 %v471_v8 }
  0x36   :  { %94 = vperm.xlu1 %370, %v529_v2   ;;  %114 = vperm.xlu0 %372, %v529_v2  }
  0x3a   :  { %371 = vset.pattern.permute.xlu1 %v472_v9  ;;  %375 = vset.pattern.permute.xlu0 %v473_v10 }
  0x3b   :  { %104 = vperm.xlu1 %371, %v529_v2   ;;  %144 = vperm.xlu0 %375, %v529_v2  }
  0x3f   :  { %373 = vset.pattern.permute.xlu1 %v474_v11  ;;  %378 = vset.pattern.permute.xlu0 %v475_v12  ;;  %v600_v12 = vsub.s32 7, %v44_v27 }
  0x40   :  { %124 = vperm.xlu1 %373, %v529_v2   ;;  %170 = vperm.xlu0 %378, %v529_v2  }
  0x44   :  { %374 = vset.pattern.permute.xlu1 %v476_v13  ;;  %381 = vset.pattern.permute.xlu0 %v477_v14 }
  0x45   :  { %134 = vperm.xlu1 %374, %v529_v2   ;;  %199 = vperm.xlu0 %381, %v529_v2  }
  0x49   :  { %376 = vset.pattern.permute.xlu1 %v478_v15  ;;  %384 = vset.pattern.permute.xlu0 %v479_v16 }
  0x4a   :  { %154 = vperm.xlu1 %376, %v529_v2   ;;  %229 = vperm.xlu0 %384, %v529_v2  }
  0x4e   :  { %377 = vset.pattern.permute.xlu1 %v480_v17  ;;  %387 = vset.pattern.permute.xlu0 %v481_v18 }
  0x4f   :  { %164 = vperm.xlu1 %377, %v529_v2   ;;  %304 = vperm.xlu0 %387, %v529_v2  }
  0x53   :  { %379 = vset.pattern.permute.xlu1 %v482_v19  ;;  %389 = vset.pattern.permute.xlu0 %v483_v20 }
  0x54   :  { %179 = vperm.xlu1 %379, %v529_v2  }
  0x58   :  { %380 = vset.pattern.permute.xlu1 %v484_v21 }
  0x59   :  { %189 = vperm.xlu1 %380, %v529_v2  }
  0x5d   :  { %382 = vset.pattern.permute.xlu1 %v485_v22 }
  0x5e   :  { %209 = vperm.xlu1 %382, %v529_v2  }
  0x62   :  { %383 = vset.pattern.permute.xlu1 %v486_v23 }
  0x63   :  { %219 = vperm.xlu1 %383, %v529_v2  }
  0x67   :  { %385 = vset.pattern.permute.xlu1 %v487_v24 }
  0x68   :  { %239 = vperm.xlu1 %385, %v529_v2  }
  0x6c   :  { %386 = vset.pattern.permute.xlu1 %v488_v25 }
  0x6d   :  { %249 = vperm.xlu1 %386, %v529_v2  }
  0x71   :  { %388 = vset.pattern.permute.xlu1 %v483_v20 }
  0x72   :  { %315 = vperm.xlu1 %388, %v529_v2   ;;  %v586_v2 = vsub.s32 6, %v44_v27 }
  0xa6   :  { %v60_v32 = vpop.permute.xlu1 %59  ;;  %v41_v33 = vpop.permute.xlu0 %40 }
  0xa7   :  { %v47_v38 = vmul.f32 %v46_v34, %v41_v33  ;;  %v66_v43 = vmul.f32 %v65_v37, %v60_v32 }
  0xab   :  { %v70_v39 = vpop.permute.xlu1 %69  ;;  %v50_v40 = vpop.permute.xlu0 %49 }
  0xac   :  { %v56_v42 = vmul.f32 %v55_v36, %v50_v40  ;;  %v76_v45 = vmul.f32 %v75_v41, %v70_v39 }
  0xae   :  { %v57_v44 = vadd.f32 %v56_v42, %v47_v38 }
  0xb0   :  { %v80_v46 = vpop.permute.xlu1 %79  ;;  %v67_v47 = vadd.f32 %v66_v43, %v57_v44  ;;  %v570_v52 = vpop.permute.xlu0 %85 }
  0xb2   :  { %v77_v48 = vadd.f32 %v76_v45, %v67_v47 }
  0xb4   :  { %v82_v49 = vadd.f32 %v80_v46, %v77_v48 }
  0xb5   :  { %v568_v50 = vpop.permute.xlu1 %94  ;;  %v583_v63 = vpop.permute.xlu0 %114 }
  0xb6   :  { %v83_v51 = vmax.f32 %v82_v49, 0.0 }
  0xb8   :  { %v91_v53 = vrot.slane %v83_v51, %v556_v28  ;;  %v100_v54 = vrot.slane %v83_v51, %v558_v29  ;;  %v110_v55 = vrot.slane %v83_v51, %v560_v31  ;;  %v120_v59 = vrot.slane %v83_v51, %v563_v35 }
  0xb9   :  { %v130_v4 = vrot.slane %v83_v51, %v581_v61  ;;  %v150_v8 = vrot.slane %v83_v51, %v586_v2  ;;  %v140_v9 = vrot.slane %v83_v51, %v591_v5  ;;  %v160_v17 = vrot.slane %v83_v51, %v600_v12 }
  0xba   :  { %v92_v56 = vmul.f32 %v91_v53, %v570_v52  ;;  %v101_v57 = vmul.f32 %v100_v54, %v568_v50  ;;  %v577_v58 = vpop.permute.xlu1 %104  ;;  %v121_v1 = vmul.f32 %v120_v59, %v583_v63  ;;  %v596_v10 = vpop.permute.xlu0 %144 }
  0xbb   :  { %v111_v60 = vmul.f32 %v110_v55, %v577_v58  ;;  %v151_v15 = vmul.f32 %v150_v8, %v596_v10 }
  0xbc   :  { %v102_v62 = vadd.f32 %v101_v57, %v92_v56 }
  0xbe   :  { %v112_v0 = vadd.f32 %v111_v60, %v102_v62 }
  0xbf   :  { %v588_v3 = vpop.permute.xlu1 %124  ;;  %v171_v30 = vpop.permute.xlu0 %170 }
  0xc0   :  { %v122_v6 = vadd.f32 %v121_v1, %v112_v0  ;;  %v131_v7 = vmul.f32 %v130_v4, %v588_v3 }
  0xc2   :  { %v132_v13 = vadd.f32 %v131_v7, %v122_v6 }
  0xc4   :  { %v598_v11 = vpop.permute.xlu1 %134  ;;  %v200_v41 = vpop.permute.xlu0 %199 }
  0xc5   :  { %v141_v14 = vmul.f32 %v140_v9, %v598_v11 }
  0xc7   :  { %v142_v16 = vadd.f32 %v141_v14, %v132_v13 }
  0xc9   :  { %v155_v18 = vpop.permute.xlu1 %154  ;;  %v152_v19 = vadd.f32 %v151_v15, %v142_v16  ;;  %v230_v49 = vpop.permute.xlu0 %229 }
  0xca   :  { %v161_v20 = vmul.f32 %v160_v17, %v155_v18 }
  0xcc   :  { %v162_v21 = vadd.f32 %v161_v20, %v152_v19 }
  0xce   :  { %v165_v22 = vpop.permute.xlu1 %164 }
  0xcf   :  { %v167_v23 = vadd.f32 %v165_v22, %v162_v21 }
  0xd1   :  { %v168_v24 = vmax.f32 %v167_v23, 0.0 }
  0xd3   :  { %v180_v25 = vpop.permute.xlu1 %179  ;;  %v176_v26 = vrot.slane %v168_v24, %v556_v28  ;;  %v185_v27 = vrot.slane %v168_v24, %v558_v29  ;;  %v195_v34 = vrot.slane %v168_v24, %v560_v31  ;;  %v205_v37 = vrot.slane %v168_v24, %v563_v35 }
  0xd4   :  { %v215_v44 = vrot.slane %v168_v24, %v581_v61  ;;  %v235_v47 = vrot.slane %v168_v24, %v586_v2  ;;  %v225_v48 = vrot.slane %v168_v24, %v591_v5  ;;  %v245_v57 = vrot.slane %v168_v24, %v600_v12 }
  0xd5   :  { %v177_v32 = vmul.f32 %v176_v26, %v171_v30  ;;  %v186_v33 = vmul.f32 %v185_v27, %v180_v25  ;;  %v206_v42 = vmul.f32 %v205_v37, %v200_v41 }
  0xd6   :  { %v236_v55 = vmul.f32 %v235_v47, %v230_v49 }
  0xd7   :  { %v187_v38 = vadd.f32 %v186_v33, %v177_v32 }
  0xd8   :  { %v190_v36 = vpop.permute.xlu1 %189 }
  0xd9   :  { %v196_v39 = vmul.f32 %v195_v34, %v190_v36 }
  0xdb   :  { %v197_v40 = vadd.f32 %v196_v39, %v187_v38 }
  0xdd   :  { %v210_v43 = vpop.permute.xlu1 %209  ;;  %v207_v45 = vadd.f32 %v206_v42, %v197_v40 }
  0xde   :  { %v216_v46 = vmul.f32 %v215_v44, %v210_v43 }
  0xe0   :  { %v217_v53 = vadd.f32 %v216_v46, %v207_v45 }
  0xe2   :  { %v220_v51 = vpop.permute.xlu1 %219 }
  0xe3   :  { %v226_v54 = vmul.f32 %v225_v48, %v220_v51 }
  0xe5   :  { %v227_v56 = vadd.f32 %v226_v54, %v217_v53 }
  0xe7   :  { %v240_v59 = vpop.permute.xlu1 %239  ;;  %v237_v60 = vadd.f32 %v236_v55, %v227_v56 }
  0xe8   :  { %v246_v62 = vmul.f32 %v245_v57, %v240_v59 }
  0xea   :  { %v247_v0 = vadd.f32 %v246_v62, %v237_v60 }
  0xec   :  { %v250_v1 = vpop.permute.xlu1 %249 }
  0xed   :  { %v252_v4 = vadd.f32 %v250_v1, %v247_v0 }
  0xef   :  { %v253_v6 = vmax.f32 %v252_v4, 0.0 }
  0xf1   :  { %v257_v7 = vrot.slane %v253_v6, %v556_v28  ;;  %v262_v8 = vrot.slane %v253_v6, %v558_v29  ;;  %v268_v9 = vrot.slane %v253_v6, %v560_v31  ;;  %v274_v15 = vrot.slane %v253_v6, %v563_v35  ;;  %v316_v36 = vpop.permute.xlu1 %315 }
  0xf2   :  { %v280_v19 = vrot.slane %v253_v6, %v581_v61  ;;  %v286_v28 = vrot.slane %v253_v6, %v591_v5  ;;  %v292_v31 = vrot.slane %v253_v6, %v586_v2  ;;  %v298_v35 = vrot.slane %v253_v6, %v600_v12 }
  0xf3   :  { %v258_v13 = vmul.f32 %v257_v7, %v570_v52  ;;  %v263_v14 = vmul.f32 %v262_v8, %v568_v50  ;;  %v269_v17 = vmul.f32 %v268_v9, %v577_v58  ;;  %v275_v21 = vmul.f32 %v274_v15, %v583_v63  ;;  %v305_v63 = vpop.permute.xlu0 %304 }
  0xf4   :  { %v281_v29 = vmul.f32 %v280_v19, %v588_v3  ;;  %v287_v50 = vmul.f32 %v286_v28, %v598_v11  ;;  %v293_v58 = vmul.f32 %v292_v31, %v596_v10  ;;  %v299_v61 = vmul.f32 %v298_v35, %v155_v18 }
  0xf5   :  { %v264_v16 = vadd.f32 %v263_v14, %v258_v13 }
  0xf7   :  { %v270_v20 = vadd.f32 %v269_v17, %v264_v16 }
  0xf9   :  { %v276_v23 = vadd.f32 %v275_v21, %v270_v20 }
  0xfb   :  { %v282_v52 = vadd.f32 %v281_v29, %v276_v23 }
  0xfd   :  { %v288_v24 = vadd.f32 %v287_v50, %v282_v52 }
  0xff   :  { %v294_v25 = vadd.f32 %v293_v58, %v288_v24 }
 0x101   :  { %v300_v26 = vadd.f32 %v299_v61, %v294_v25 }
 0x103   :  { %v301_v27 = vadd.f32 %v300_v26, %v165_v22 }
 0x105   :  { %v302_v30 = vmax.f32 %v301_v27, 0.0 }
 0x107   :  { %v307_v5 = vmul.f32 %v305_v63, %v302_v30 }
 0x109   :  { %v308_v32 = vrot.slane %v307_v5, 4 }
 0x10b   :  { %v309_v33 = vadd.f32 %v308_v32, %v307_v5 }
 0x10d   :  { %v310_v3 = vrot.slane %v309_v33, 2 }
 0x10f   :  { %v311_v34 = vadd.f32 %v310_v3, %v309_v33 }
 0x111   :  { %v312_v2 = vrot.slane %v311_v34, 1 }
 0x113   :  { %v313_v11 = vadd.f32 %v312_v2, %v311_v34 }
 0x115   :  { %v318_v12 = vadd.f32 %v316_v36, %v313_v11 }
 0x117   :  { %319 = vst [vmem:[#allocation7] sm:$0x1] %v318_v12 }
 0x118   :  { %445 = shalt.err (!%p442_p6)
}
 0x119   :  { %s446_s9 = scalar_lea.hbm %s642_s2, 16 }
 0x11a   :  { %p447_p7 = scmp.ne.s32.totalorder %s642_s2, %s446_s9  ;;  %p450_p8 = scmp.lt.u32.totalorder %s446_s9, %s642_s2 }
 0x11c   :  { %p452_p9 = pnand %p450_p8, %p447_p7 }
 0x11e   :  { %455 = shalt.err (!%p452_p9)
}
 0x11f   :  { %329 = dma.vmem_to_hbm [thread:$0]  %s327_s4, 16, %s642_s2, [#allocation4]  }
 0x120   :  { %460 = dma.done.wait [#allocation4], 16  }
 0x121   :  { %461 = vsyncadd [#allocation4], 4294967280 }
 0x122   :  { %333 = vsyncpa [#allocation3], 1 }
 0x123   :  { %334 = vsyncpa [#allocation6], 1 }
 0x124   :  { %335 = vsyncpa [#allocation4], 1 }

</bundles_post_ra>
